<compile_context>
chip_gen: v6e
topology: v6e:2x2x1
jax: 0.10.0
libtpu: 0.0.40
codegen_flags: <defaults>
</compile_context>

<pallas_src>
import numpy as np
import jax
import jax.numpy as jnp
from jax.experimental import pallas as pl
from jax.experimental.pallas import tpu as pltpu


WEATHER_PAD = 16    # bf16 sublane minimum; holds weather feats + one bias lane
OUT_PAD = 128       # lane-pad the final logits (lane-dense, unmasked stores)
FEAT_C = 512        # resnet18 final channel count


# -----------------------------------------------------------------------------
# Pallas kernel: fused GAP -> [fc folded into fc1, single stacked matmul]
#                -> relu -> fc3
# -----------------------------------------------------------------------------
def fused_head_kernel(x_ref, wx_ref, ws_ref, w3_ref, b3_ref, o_ref):
    """
    x_ref : (B, HW, 512)      bf16  conv feature map, channels-last (lane = 512)
    wx_ref: (B, 16)           bf16  weather feats (cols 0:Wf), 1.0 bias lane at col Wf
    ws_ref: (512+16, 512)     bf16  stacked weight:
                                      rows   0:512     fc_w @ fc1_w[:1000]
                                      rows 512:512+Wf  fc1_w[1000:]
                                      row  512+Wf      fc_b @ fc1_w[:1000] + fc1_b
    w3_ref: (512, 128)        bf16  fc3 weight, zero-padded cols
    b3_ref: (1, 128)          f32   fc3 bias, zero-padded cols
    o_ref : (B, 128)          f32   padded logits (valid cols = num_classes)
    """
    # Global average pool over the spatial (sublane) axis; accumulate in f32.
    feats = jnp.mean(x_ref[...].astype(jnp.float32), axis=1)      # (B, 512)

    # Single lane-dense activation: [feats | weather | 1.0 bias lane | zeros].
    act = jnp.concatenate([feats.astype(jnp.bfloat16), wx_ref[...]],
                          axis=1)                                  # (B, 528)

    # One stacked matmul == feats@W_fused + weather@W1b + b_fused.
    h = jnp.dot(act, ws_ref[...], preferred_element_type=jnp.float32)
    h = jnp.maximum(h, 0.0).astype(jnp.bfloat16)                   # ReLU

    o_ref[...] = (
        jnp.dot(h, w3_ref[...], preferred_element_type=jnp.float32)
        + b3_ref[...]
    )


def _vmem_spec():
    return pl.BlockSpec(memory_space=pltpu.MemorySpace.VMEM)


def pallas_fused_head(x_hw_c, weather_pad, head):
    """x_hw_c: (B, HW, 512) bf16; weather_pad: (B, 16) bf16."""
    B = x_hw_c.shape[0]
    ks = head["w_stacked"].shape[0]
    cost = pl.CostEstimate(
        flops=2 * B * ks * FEAT_C + 2 * B * FEAT_C * OUT_PAD,
        transcendentals=0,
        bytes_accessed=(x_hw_c.size * 2 + weather_pad.size * 2
                        + head["w_stacked"].size * 2 + head["w3_pad"].size * 2
                        + head["b3_pad"].size * 4 + B * OUT_PAD * 4),
    )
    return pl.pallas_call(
        fused_head_kernel,
        out_shape=jax.ShapeDtypeStruct((B, OUT_PAD), jnp.float32),
        in_specs=[_vmem_spec() for _ in range(5)],
        out_specs=_vmem_spec(),
        cost_estimate=cost,
    )(x_hw_c, weather_pad, head["w_stacked"], head["w3_pad"], head["b3_pad"])


# -----------------------------------------------------------------------------
# Deterministic parameter construction (+ build-time folding)
# -----------------------------------------------------------------------------
class ParamGen:
    def __init__(self, seed=0):
        self.key = jax.random.PRNGKey(seed)
        self.i = 0

    def _next(self):
        self.i += 1
        return jax.random.fold_in(self.key, self.i)

    def conv(self, in_c, out_c, kh, kw):
        # HWIO layout (NHWC backbone).
        fan_in = in_c * kh * kw
        return jax.random.normal(self._next(), (kh, kw, in_c, out_c),
                                 jnp.float32) * np.sqrt(2.0 / fan_in)

    def linear(self, in_f, out_f):
        w = jax.random.normal(self._next(), (in_f, out_f),
                              jnp.float32) * np.sqrt(1.0 / in_f)
        b = jax.random.normal(self._next(), (1, out_f), jnp.float32) * 0.01
        return w, b


def make_bn(c):
    # eval-mode BatchNorm params: gamma, beta, running_mean, running_var
    return (jnp.ones((c,), jnp.float32), jnp.zeros((c,), jnp.float32),
            jnp.zeros((c,), jnp.float32), jnp.ones((c,), jnp.float32))


def fold_bn_into_conv(w, bn, eps=1e-5):
    """Fold eval-mode BN into the preceding HWIO conv: returns (w', b')."""
    gamma, beta, mean, var = bn
    scale = gamma / jnp.sqrt(var + eps)
    return w * scale, beta - mean * scale   # scale broadcasts over last (O) axis


def make_resnet18_params(gen):
    def conv_bn(out_c, in_c, k):
        return fold_bn_into_conv(gen.conv(in_c, out_c, k, k), make_bn(out_c))

    p = {"conv1": conv_bn(64, 3, 7), "layers": []}
    cfg = [(64, 64, 1), (64, 128, 2), (128, 256, 2), (256, 512, 2)]
    strides = []
    for in_c, out_c, stride in cfg:
        blocks, bstr = [], []
        b0 = {"c1": conv_bn(out_c, in_c, 3), "c2": conv_bn(out_c, out_c, 3)}
        if stride != 1 or in_c != out_c:
            b0["down"] = conv_bn(out_c, in_c, 1)
        blocks.append(b0); bstr.append(stride)
        b1 = {"c1": conv_bn(out_c, out_c, 3), "c2": conv_bn(out_c, out_c, 3)}
        blocks.append(b1); bstr.append(1)
        p["layers"].append(blocks)
        strides.append(bstr)
    p["fc_w"], p["fc_b"] = gen.linear(FEAT_C, 1000)   # folded into the head below
    return p, strides


def build_head_params(fc_w, fc_b, fc1_w, fc1_b, fc3_w, fc3_b, num_weather):
    """Fold resnet.fc into fc1, stack image/weather/bias rows into one weight."""
    assert num_weather + 1 <= WEATHER_PAD
    w1a = fc1_w[:1000]                      # (1000, 512) image half of fc1
    w1b = fc1_w[1000:]                      # (Wf, 512)   weather half of fc1
    w_fused = fc_w @ w1a                    # (512, 512) f32
    b_fused = fc_b @ w1a + fc1_b            # (1, 512)   f32

    ws = jnp.zeros((FEAT_C + WEATHER_PAD, FEAT_C), jnp.float32)
    ws = ws.at[:FEAT_C].set(w_fused)
    ws = ws.at[FEAT_C:FEAT_C + num_weather].set(w1b)
    ws = ws.at[FEAT_C + num_weather].set(b_fused[0])   # paired with 1.0 act lane
    w_stacked = ws.astype(jnp.bfloat16)                 # (528, 512)

    c = fc3_w.shape[1]
    w3_pad = (jnp.zeros((FEAT_C, OUT_PAD), jnp.float32)
              .at[:, :c].set(fc3_w).astype(jnp.bfloat16))   # (512, 128)
    b3_pad = jnp.zeros((1, OUT_PAD), jnp.float32).at[:, :c].set(fc3_b)
    return {"w_stacked": w_stacked, "w3_pad": w3_pad, "b3_pad": b3_pad}


# -----------------------------------------------------------------------------
# XLA ResNet18 backbone, native NHWC (BN pre-folded into conv weights)
# -----------------------------------------------------------------------------
def conv_bias(x, wb, stride, pad):
    w, b = wb
    y = jax.lax.conv_general_dilated(
        x, w, window_strides=(stride, stride),
        padding=[(pad, pad), (pad, pad)],
        dimension_numbers=("NHWC", "HWIO", "NHWC"))
    return y + b                                  # b broadcasts over channel lanes


def maxpool_3x3_s2(x):
    return jax.lax.reduce_window(
        x, -jnp.inf, jax.lax.max,
        window_dimensions=(1, 3, 3, 1), window_strides=(1, 2, 2, 1),
        padding=((0, 0), (1, 1), (1, 1), (0, 0)))


def basic_block(x, bp, stride):
    identity = x
    out = jax.nn.relu(conv_bias(x, bp["c1"], stride, 1))
    out = conv_bias(out, bp["c2"], 1, 1)
    if "down" in bp:
        identity = conv_bias(x, bp["down"], stride, 0)
    return jax.nn.relu(out + identity)


def resnet18_features(x_nchw, p, strides):
    """Conv backbone up to (but not including) GAP/fc.  Returns (B, HW, 512) bf16."""
    x = jnp.transpose(x_nchw, (0, 2, 3, 1))        # NCHW interface -> NHWC once, cheap
    x = jax.nn.relu(conv_bias(x, p["conv1"], 2, 3))
    x = maxpool_3x3_s2(x)
    for blocks, bstr in zip(p["layers"], strides):
        for bp, s in zip(blocks, bstr):
            x = basic_block(x, bp, s)
    B, H, W, C = x.shape
    # Already channels-last: channel axis sits in lanes for the kernel; bf16 halves DMA.
    return x.reshape(B, H * W, C).astype(jnp.bfloat16)


# -----------------------------------------------------------------------------
# Full Model.forward
# -----------------------------------------------------------------------------
def model_forward(x, weather, resnet_params, strides, head_params, num_classes):
    feats = resnet18_features(x, resnet_params, strides)       # (B, HW, 512) bf16
    B = x.shape[0]
    wf = weather.shape[1]
    wpad = jnp.zeros((B, WEATHER_PAD), jnp.float32)
    wpad = wpad.at[:, :wf].set(weather)
    wpad = wpad.at[:, wf].set(1.0)                               # bias lane
    wpad = wpad.astype(jnp.bfloat16)
    logits_pad = pallas_fused_head(feats, wpad, head_params)    # (B, 128)
    return logits_pad[:, :num_classes]


if __name__ == "__main__":
    NUM_CLASSES = 5
    NUM_WEATHER = 4
    B, H, W = 2, 64, 64

    gen = ParamGen(seed=0)
    resnet_params, resnet_strides = make_resnet18_params(gen)
    fc1_w, fc1_b = gen.linear(1000 + NUM_WEATHER, 512)
    fc3_w, fc3_b = gen.linear(512, NUM_CLASSES)
    head_params = build_head_params(resnet_params["fc_w"], resnet_params["fc_b"],
                                    fc1_w, fc1_b, fc3_w, fc3_b, NUM_WEATHER)

    k = jax.random.PRNGKey(0)
    kx, kw = jax.random.split(k)
    x = jax.random.normal(kx, (B, 3, H, W), jnp.float32)
    weather = jax.random.normal(kw, (B, NUM_WEATHER), jnp.float32)

    fwd = jax.jit(lambda xx, ww: model_forward(
        xx, ww, resnet_params, resnet_strides, head_params, NUM_CLASSES))

    out = jax.block_until_ready(fwd(x, weather))
    assert out.shape == (B, NUM_CLASSES), out.shape
    assert bool(jnp.all(jnp.isfinite(out)))
    print("KERNEL_OK")
</pallas_src>

<mosaic_0001>
module attributes {stable_mosaic.version = 11 : i64} {
  func.func @fused_head_kernel(%arg0: memref<2x4x512xbf16, #tpu.memory_space<vmem>>, %arg1: memref<2x16xbf16, #tpu.memory_space<vmem>>, %arg2: memref<528x512xbf16, #tpu.memory_space<vmem>>, %arg3: memref<512x128xbf16, #tpu.memory_space<vmem>>, %arg4: memref<1x128xf32, #tpu.memory_space<vmem>>, %arg5: memref<2x128xf32, #tpu.memory_space<vmem>>) attributes {dimension_semantics = [], scalar_prefetch = 0 : i64, scratch_operands = 0 : i64, tpu.core_type = #tpu.core_type<tc>} {
    %c0 = arith.constant 0 : index
    %c0_0 = arith.constant 0 : index
    %c0_1 = arith.constant 0 : index
    %0 = vector.load %arg0[%c0, %c0_0, %c0_1] : memref<2x4x512xbf16, #tpu.memory_space<vmem>>, vector<2x4x512xbf16>
    %1 = arith.extf %0 : vector<2x4x512xbf16> to vector<2x4x512xf32>
    %cst = arith.constant dense<0.000000e+00> : vector<2x512xf32>
    %2 = vector.multi_reduction <add>, %1, %cst [1] : vector<2x4x512xf32> to vector<2x512xf32>
    %cst_2 = arith.constant 4.000000e+00 : f32
    %3 = vector.broadcast %cst_2 : f32 to vector<2x512xf32>
    %4 = arith.divf %2, %3 : vector<2x512xf32>
    %5 = arith.truncf %4 : vector<2x512xf32> to vector<2x512xbf16>
    %c0_3 = arith.constant 0 : index
    %c0_4 = arith.constant 0 : index
    %6 = vector.load %arg1[%c0_3, %c0_4] : memref<2x16xbf16, #tpu.memory_space<vmem>>, vector<2x16xbf16>
    %7 = tpu.concatenate %5, %6 in 1 : vector<2x512xbf16>, vector<2x16xbf16> -> vector<2x528xbf16>
    %c0_5 = arith.constant 0 : index
    %c0_6 = arith.constant 0 : index
    %8 = vector.load %arg2[%c0_5, %c0_6] : memref<528x512xbf16, #tpu.memory_space<vmem>>, vector<528x512xbf16>
    %cst_7 = arith.constant dense<0.000000e+00> : vector<2x512xf32>
    %9 = tpu.matmul %7, %8, %cst_7 {dimension_numbers = #tpu.dot_dimension_numbers<[1], [0], [0], [1], [0, 0, 1, 1], [], []>} : vector<2x528xbf16>, vector<528x512xbf16>, vector<2x512xf32> -> vector<2x512xf32>
    %cst_8 = arith.constant 0.000000e+00 : f32
    %10 = vector.broadcast %cst_8 : f32 to vector<2x512xf32>
    %11 = arith.maximumf %9, %10 : vector<2x512xf32>
    %12 = arith.truncf %11 : vector<2x512xf32> to vector<2x512xbf16>
    %c0_9 = arith.constant 0 : index
    %c0_10 = arith.constant 0 : index
    %13 = vector.load %arg3[%c0_9, %c0_10] : memref<512x128xbf16, #tpu.memory_space<vmem>>, vector<512x128xbf16>
    %cst_11 = arith.constant dense<0.000000e+00> : vector<2x128xf32>
    %14 = tpu.matmul %12, %13, %cst_11 {dimension_numbers = #tpu.dot_dimension_numbers<[1], [0], [0], [1], [0, 0, 1, 1], [], []>} : vector<2x512xbf16>, vector<512x128xbf16>, vector<2x128xf32> -> vector<2x128xf32>
    %c0_12 = arith.constant 0 : index
    %c0_13 = arith.constant 0 : index
    %15 = vector.load %arg4[%c0_12, %c0_13] : memref<1x128xf32, #tpu.memory_space<vmem>>, vector<1x128xf32>
    %16 = vector.broadcast %15 : vector<1x128xf32> to vector<2x128xf32>
    %17 = arith.addf %14, %16 : vector<2x128xf32>
    %c0_14 = arith.constant 0 : index
    %c0_15 = arith.constant 0 : index
    %18 = vector.load %arg5[%c0_14, %c0_15] : memref<2x128xf32, #tpu.memory_space<vmem>>, vector<2x128xf32>
    tpu.vector_store %arg5[%c0_14, %c0_15], %17 {strides = array<i32>} : memref<2x128xf32, #tpu.memory_space<vmem>>, vector<2x128xf32>,
    return
  }
}

</mosaic_0001>

<bundles_post_ra>
// kernel: _lambda_.1
= control target key start
LH: loop header
LB: loop body
LE: loop exit
PB: predicated region body
PF: predicated region fallthrough
CT: control target
= control target key end

     0   :  { %vm40_vm0 = vcmask 1043456   ;;  %vm131_vm1 = vcmask 1041409   ;;  %vm936_vm2 = vcmask 130048   ;;  %s2584_s0 = inlined_call_operand.vmem [shape: bf16[2,4,512], index: 0, kind: input, shape index: {}]   ;;  %s2585_s1 = inlined_call_operand.vmem [shape: bf16[2,16], index: 1, kind: input, shape index: {}]   ;;  %s2586_s2 = inlined_call_operand.vmem [shape: bf16[528,512], index: 2, kind: input, shape index: {}]   ;;  %s2587_s3 = inlined_call_operand.vmem [shape: bf16[512,128], index: 3, kind: input, shape index: {}]   ;;  %s2588_s4 = inlined_call_operand.vmem [shape: f32[1,128], index: 4, kind: input, shape index: {}]   ;;  %s2589_s5 = inlined_call_operand.hbm [shape: f32[2,128], index: 5, kind: output, shape index: {}]  }
   0x1   :  { %v1765_v0 = vld [vmem:[%s2586_s2 + $0xe4] ss:$16 sps:$4 sm:$0xff]   ;;  %v1769_v2 = vld [vmem:[%s2586_s2 + $0xe0] ss:$16 sps:$4 sm:$0xff]   ;;  %v23_v48 = vld [vmem:[%s2584_s0 + $0x8] sm:$0xff] }
   0x2   :  { %v1767_v1 = vld [vmem:[%s2586_s2 + $0x2e4] ss:$16 sps:$4 sm:$0xff]   ;;  %940 = vmatprep.subr.bf16.mxu0 %v1765_v0  ;;  %v1770_v3 = vld [vmem:[%s2586_s2 + $0x2e0] ss:$16 sps:$4 sm:$0xff]   ;;  %v26_v53 = vunpack.c.l.bf16 %v23_v48  ;;  %v27_v54 = vunpack.c.h.bf16 %v23_v48 }
   0x3   :  { %981 = vmatprep.subr.bf16.mxu1 %v1767_v1  ;;  %v1771_v4 = vld [vmem:[%s2586_s2 + $0xc4] ss:$16 sps:$4 sm:$0xff]   ;;  %941 = vmatpush1.bf16.msra.mxu0 %v1769_v2  ;;  %v1775_v6 = vld [vmem:[%s2586_s2 + $0xc0] ss:$16 sps:$4 sm:$0xff]  }
   0x4   :  { %982 = vmatpush1.bf16.msra.mxu1 %v1770_v3  ;;  %v1773_v5 = vld [vmem:[%s2586_s2 + $0x2c4] ss:$16 sps:$4 sm:$0xff]   ;;  %942 = vmatprep.subr.bf16.mxu0 %v1771_v4  ;;  %v1776_v7 = vld [vmem:[%s2586_s2 + $0x2c0] ss:$16 sps:$4 sm:$0xff]   ;;  %v34_v61 = vcombine.high %v26_v53, %v26_v53  ;;  %v35_v62 = vcombine.high %v27_v54, %v27_v54  ;;  %v69_v0 = vsel %vm40_vm0, %v26_v53, 0.0 }
   0x5   :  { %983 = vmatprep.subr.bf16.mxu1 %v1773_v5  ;;  %v1777_v8 = vld [vmem:[%s2586_s2 + $0xa4] ss:$16 sps:$4 sm:$0xff]   ;;  %v1781_v10 = vld [vmem:[%s2586_s2 + $0xa0] ss:$16 sps:$4 sm:$0xff]   ;;  %v70_v4 = vrot.slane %v69_v0, 4 }
   0x6   :  { %v1779_v9 = vld [vmem:[%s2586_s2 + $0x2a4] ss:$16 sps:$4 sm:$0xff]   ;;  %v1782_v11 = vld [vmem:[%s2586_s2 + $0x2a0] ss:$16 sps:$4 sm:$0xff]  }
   0x7   :  { %943 = vmatpush1.bf16.msra.mxu0 %v1775_v6  ;;  %v1783_v12 = vld [vmem:[%s2586_s2 + $0x84] ss:$16 sps:$4 sm:$0xff]   ;;  %v1787_v14 = vld [vmem:[%s2586_s2 + $0x80] ss:$16 sps:$4 sm:$0xff]  }
   0x8   :  { %984 = vmatpush1.bf16.msra.mxu1 %v1776_v7  ;;  %944 = vmatprep.subr.bf16.mxu0 %v1777_v8  ;;  %v1785_v13 = vld [vmem:[%s2586_s2 + $0x284] ss:$16 sps:$4 sm:$0xff]   ;;  %v1788_v15 = vld [vmem:[%s2586_s2 + $0x280] ss:$16 sps:$4 sm:$0xff]   ;;  %v76_v8 = vsel %vm40_vm0, %v34_v61, 0.0 }
   0x9   :  { %985 = vmatprep.subr.bf16.mxu1 %v1779_v9  ;;  %v1789_v16 = vld [vmem:[%s2586_s2 + $0x64] ss:$16 sps:$4 sm:$0xff]   ;;  %v1793_v18 = vld [vmem:[%s2586_s2 + $0x60] ss:$16 sps:$4 sm:$0xff]  }
   0xa   :  { %v1791_v17 = vld [vmem:[%s2586_s2 + $0x264] ss:$16 sps:$4 sm:$0xff]   ;;  %v1794_v19 = vld [vmem:[%s2586_s2 + $0x260] ss:$16 sps:$4 sm:$0xff]  }
   0xb   :  { %945 = vmatpush1.bf16.msra.mxu0 %v1781_v10  ;;  %v1795_v20 = vld [vmem:[%s2586_s2 + $0x44] ss:$16 sps:$4 sm:$0xff]   ;;  %v1799_v22 = vld [vmem:[%s2586_s2 + $0x40] ss:$16 sps:$4 sm:$0xff]   ;;  %v90_v10 = vsel %vm40_vm0, %v35_v62, 0.0 }
   0xc   :  { %986 = vmatpush1.bf16.msra.mxu1 %v1782_v11  ;;  %946 = vmatprep.subr.bf16.mxu0 %v1783_v12  ;;  %v1797_v21 = vld [vmem:[%s2586_s2 + $0x244] ss:$16 sps:$4 sm:$0xff]   ;;  %v1800_v23 = vld [vmem:[%s2586_s2 + $0x240] ss:$16 sps:$4 sm:$0xff]   ;;  %v77_v12 = vrot.slane %v76_v8, 4 }
   0xd   :  { %987 = vmatprep.subr.bf16.mxu1 %v1785_v13  ;;  %v1801_v24 = vld [vmem:[%s2586_s2 + $0x24] ss:$16 sps:$4 sm:$0xff]   ;;  %v1805_v26 = vld [vmem:[%s2586_s2 + $0x20] ss:$16 sps:$4 sm:$0xff]   ;;  %v91_v13 = vrot.slane %v90_v10, 4 }
   0xe   :  { %v1803_v25 = vld [vmem:[%s2586_s2 + $0x224] ss:$16 sps:$4 sm:$0xff]   ;;  %v1806_v27 = vld [vmem:[%s2586_s2 + $0x220] ss:$16 sps:$4 sm:$0xff]  }
   0xf   :  { %947 = vmatpush1.bf16.msra.mxu0 %v1787_v14  ;;  %v1807_v28 = vld [vmem:[%s2586_s2 + $0x4] ss:$16 sps:$4 sm:$0xff]   ;;  %v1811_v30 = vld [vmem:[%s2586_s2] ss:$16 sps:$4 sm:$0xff]  }
  0x10   :  { %988 = vmatpush1.bf16.msra.mxu1 %v1788_v15  ;;  %948 = vmatprep.subr.bf16.mxu0 %v1789_v16  ;;  %v1809_v29 = vld [vmem:[%s2586_s2 + $0x204] ss:$16 sps:$4 sm:$0xff]   ;;  %v1812_v31 = vld [vmem:[%s2586_s2 + $0x200] ss:$16 sps:$4 sm:$0xff]   ;;  %v71_v15 = vadd.f32 %v70_v4, %v69_v0 }
  0x11   :  { %989 = vmatprep.subr.bf16.mxu1 %v1791_v17  ;;  %v1813_v32 = vld [vmem:[%s2586_s2 + $0x1e4] ss:$16 sps:$4 sm:$0xff]   ;;  %v1817_v34 = vld [vmem:[%s2586_s2 + $0x1e0] ss:$16 sps:$4 sm:$0xff]  }
  0x12   :  { %v1815_v33 = vld [vmem:[%s2586_s2 + $0x3e4] ss:$16 sps:$4 sm:$0xff]   ;;  %v1818_v35 = vld [vmem:[%s2586_s2 + $0x3e0] ss:$16 sps:$4 sm:$0xff]  }
  0x13   :  { %949 = vmatpush1.bf16.msra.mxu0 %v1793_v18  ;;  %v1819_v36 = vld [vmem:[%s2586_s2 + $0x1c4] ss:$16 sps:$4 sm:$0xff]   ;;  %v1823_v38 = vld [vmem:[%s2586_s2 + $0x1c0] ss:$16 sps:$4 sm:$0xff]  }
  0x14   :  { %990 = vmatpush1.bf16.msra.mxu1 %v1794_v19  ;;  %950 = vmatprep.subr.bf16.mxu0 %v1795_v20  ;;  %v1821_v37 = vld [vmem:[%s2586_s2 + $0x3c4] ss:$16 sps:$4 sm:$0xff]   ;;  %v1824_v39 = vld [vmem:[%s2586_s2 + $0x3c0] ss:$16 sps:$4 sm:$0xff]   ;;  %v83_v19 = vsel %vm40_vm0, %v27_v54, 0.0 }
  0x15   :  { %991 = vmatprep.subr.bf16.mxu1 %v1797_v21  ;;  %v1825_v40 = vld [vmem:[%s2586_s2 + $0x1a4] ss:$16 sps:$4 sm:$0xff]   ;;  %v1829_v42 = vld [vmem:[%s2586_s2 + $0x1a0] ss:$16 sps:$4 sm:$0xff]  }
  0x16   :  { %v1827_v41 = vld [vmem:[%s2586_s2 + $0x3a4] ss:$16 sps:$4 sm:$0xff]   ;;  %v1830_v43 = vld [vmem:[%s2586_s2 + $0x3a0] ss:$16 sps:$4 sm:$0xff]  }
  0x17   :  { %951 = vmatpush1.bf16.msra.mxu0 %v1799_v22  ;;  %v1831_v44 = vld [vmem:[%s2586_s2 + $0x184] ss:$16 sps:$4 sm:$0xff]   ;;  %v1835_v46 = vld [vmem:[%s2586_s2 + $0x180] ss:$16 sps:$4 sm:$0xff]   ;;  %v78_v22 = vadd.f32 %v77_v12, %v76_v8 }
  0x18   :  { %992 = vmatpush1.bf16.msra.mxu1 %v1800_v23  ;;  %952 = vmatprep.subr.bf16.mxu0 %v1801_v24  ;;  %v1833_v45 = vld [vmem:[%s2586_s2 + $0x384] ss:$16 sps:$4 sm:$0xff]   ;;  %v1836_v51 = vld [vmem:[%s2586_s2 + $0x380] ss:$16 sps:$4 sm:$0xff]   ;;  %v92_v23 = vadd.f32 %v91_v13, %v90_v10 }
  0x19   :  { %993 = vmatprep.subr.bf16.mxu1 %v1803_v25  ;;  %v22_v47 = vld [vmem:[%s2584_s0] sm:$0xff]  ;;  %v72_v25 = vrot.slane %v71_v15, 2 }
  0x1a   :  { %v24_v49 = vunpack.c.l.bf16 %v22_v47  ;;  %v25_v50 = vunpack.c.h.bf16 %v22_v47  ;;  %v1837_v52 = vld [vmem:[%s2586_s2 + $0x164] ss:$16 sps:$4 sm:$0xff]   ;;  %v1841_v60 = vld [vmem:[%s2586_s2 + $0x160] ss:$16 sps:$4 sm:$0xff]  }
  0x1b   :  { %953 = vmatpush1.bf16.msra.mxu0 %v1805_v26  ;;  %v1839_v55 = vld [vmem:[%s2586_s2 + $0x364] ss:$16 sps:$4 sm:$0xff]   ;;  %v1842_v1 = vld [vmem:[%s2586_s2 + $0x360] ss:$16 sps:$4 sm:$0xff]  }
  0x1c   :  { %994 = vmatpush1.bf16.msra.mxu1 %v1806_v27  ;;  %954 = vmatprep.subr.bf16.mxu0 %v1807_v28  ;;  %v32_v56 = vcombine.high %v24_v49, %v24_v49  ;;  %v33_v57 = vcombine.high %v25_v50, %v25_v50  ;;  %v41_v58 = vsel %vm40_vm0, %v24_v49, 0.0  ;;  %v55_v59 = vsel %vm40_vm0, %v25_v50, 0.0  ;;  %v1843_v6 = vld [vmem:[%s2586_s2 + $0x144] ss:$16 sps:$4 sm:$0xff]   ;;  %v1847_v20 = vld [vmem:[%s2586_s2 + $0x140] ss:$16 sps:$4 sm:$0xff]  }
  0x1d   :  { %995 = vmatprep.subr.bf16.mxu1 %v1809_v29  ;;  %v42_v63 = vrot.slane %v41_v58, 4  ;;  %v56_v5 = vrot.slane %v55_v59, 4  ;;  %v1845_v11 = vld [vmem:[%s2586_s2 + $0x344] ss:$16 sps:$4 sm:$0xff]   ;;  %v1848_v21 = vld [vmem:[%s2586_s2 + $0x340] ss:$16 sps:$4 sm:$0xff]  }
  0x1e   :  { %v48_v2 = vsel %vm40_vm0, %v32_v56, 0.0  ;;  %v62_v3 = vsel %vm40_vm0, %v33_v57, 0.0  ;;  %v84_v29 = vrot.slane %v83_v19, 4  ;;  %v1859_v56 = vld [vmem:[%s2586_s2 + $0x100] ss:$16 sps:$4 sm:$0xff]  }
  0x1f   :  { %955 = vmatpush1.bf16.msra.mxu0 %v1811_v30  ;;  %v49_v7 = vrot.slane %v48_v2, 4  ;;  %v63_v9 = vrot.slane %v62_v3, 4  ;;  %v43_v14 = vadd.f32 %v42_v63, %v41_v58  ;;  %v57_v18 = vadd.f32 %v56_v5, %v55_v59  ;;  %v1849_v30 = vld [vmem:[%s2586_s2 + $0x124] ss:$16 sps:$4 sm:$0xff]   ;;  %v1860_v61 = vld [vmem:[%s2586_s2 + $0x300] ss:$16 sps:$4 sm:$0xff]  }
  0x20   :  { %996 = vmatpush1.bf16.msra.mxu1 %v1812_v31  ;;  %956 = vmatprep.subr.bf16.mxu0 %v1813_v32  ;;  %v1851_v31 = vld [vmem:[%s2586_s2 + $0x324] ss:$16 sps:$4 sm:$0xff]   ;;  %v79_v32 = vrot.slane %v78_v22, 2 }
  0x21   :  { %997 = vmatprep.subr.bf16.mxu1 %v1815_v33  ;;  %v50_v16 = vadd.f32 %v49_v7, %v48_v2  ;;  %v64_v17 = vadd.f32 %v63_v9, %v62_v3  ;;  %v44_v24 = vrot.slane %v43_v14, 2  ;;  %v58_v28 = vrot.slane %v57_v18, 2 }
  0x22   :  { %v93_v33 = vrot.slane %v92_v23, 2 }
  0x23   :  { %957 = vmatpush2.bf16.msra.mxu0 %v1817_v34  ;;  %v51_v26 = vrot.slane %v50_v16, 2  ;;  %v65_v27 = vrot.slane %v64_v17, 2  ;;  %v45_v34 = vadd.f32 %v44_v24, %v43_v14 }
  0x24   :  { %998 = vmatpush2.bf16.msra.mxu1 %v1818_v35  ;;  %958 = vmatprep.subr.bf16.mxu0 %v1819_v36  ;;  %v73_v35 = vadd.f32 %v72_v25, %v71_v15  ;;  %v1853_v36 = vld [vmem:[%s2586_s2 + $0x120] ss:$16 sps:$4 sm:$0xff]  }
  0x25   :  { %999 = vmatprep.subr.bf16.mxu1 %v1821_v37  ;;  %v52_v37 = vadd.f32 %v51_v26, %v50_v16 }
  0x27   :  { %959 = vmatpush2.bf16.msra.mxu0 %v1823_v38  ;;  %v66_v38 = vadd.f32 %v65_v27, %v64_v17  ;;  %v53_v47 = vrot.slane %v52_v37, 1 }
  0x28   :  { %1000 = vmatpush2.bf16.msra.mxu1 %v1824_v39  ;;  %960 = vmatprep.subr.bf16.mxu0 %v1825_v40  ;;  %v59_v39 = vadd.f32 %v58_v28, %v57_v18  ;;  %v85_v40 = vadd.f32 %v84_v29, %v83_v19 }
  0x29   :  { %1001 = vmatprep.subr.bf16.mxu1 %v1827_v41  ;;  %v1854_v41 = vld [vmem:[%s2586_s2 + $0x320] ss:$16 sps:$4 sm:$0xff]   ;;  %v67_v48 = vrot.slane %v66_v38, 1  ;;  %v54_v57 = vadd.f32 %v53_v47, %v52_v37  ;;  %v1864_v37 = vld [vmem:[%s2586_s2 + $0xe8] ss:$16 sps:$4 sm:$0xff]  }
  0x2a   :  { %v60_v49 = vrot.slane %v59_v39, 1  ;;  %v86_v50 = vrot.slane %v85_v40, 2  ;;  %v1881_v47 = vld [vmem:[%s2586_s2 + $0x8c] ss:$16 sps:$4 sm:$0xff]  }
  0x2b   :  { %961 = vmatpush2.bf16.msra.mxu0 %v1829_v42  ;;  %v80_v42 = vadd.f32 %v79_v32, %v78_v22  ;;  %v68_v58 = vadd.f32 %v67_v48, %v66_v38  ;;  %v99_v2 = vmul.f32 0.25, %v54_v57  ;;  %v1876_v48 = vld [vmem:[%s2586_s2 + $0x2c8] ss:$16 sps:$4 sm:$0xff]   ;;  %v1896_v57 = vld [vmem:[%s2586_s2 + $0x26c] ss:$16 sps:$4 sm:$0xff]  }
  0x2c   :  { %1002 = vmatpush2.bf16.msra.mxu1 %v1830_v43  ;;  %962 = vmatprep.subr.bf16.mxu0 %v1831_v44  ;;  %v94_v43 = vadd.f32 %v93_v33, %v92_v23  ;;  %v46_v44 = vrot.slane %v45_v34, 1  ;;  %v61_v59 = vadd.f32 %v60_v49, %v59_v39  ;;  %v1869_v39 = vld [vmem:[%s2586_s2 + $0xcc] ss:$16 sps:$4 sm:$0xff]  }
  0x2d   :  { %1003 = vmatprep.subr.bf16.mxu1 %v1833_v45  ;;  %v74_v45 = vrot.slane %v73_v35, 1  ;;  %v101_v3 = vmul.f32 0.25, %v68_v58  ;;  %v107_v12 = vpack.c.bf16 %v99_v2, %v99_v2  ;;  %v1884_v49 = vld [vmem:[%s2586_s2 + $0x2ac] ss:$16 sps:$4 sm:$0xff]   ;;  %v1891_v58 = vld [vmem:[%s2586_s2 + $0x48] ss:$16 sps:$4 sm:$0xff]  }
  0x2e   :  { %v95_v53 = vrot.slane %v94_v43, 1  ;;  %v47_v54 = vadd.f32 %v46_v44, %v45_v34  ;;  %v100_v5 = vmul.f32 0.25, %v61_v59  ;;  %v1861_v34 = vld [vmem:[%s2586_s2 + $0x400] ss:$16 sps:$4 sm:$0xff]   ;;  %v1899_v59 = vld [vmem:[%s2586_s2 + $0x2c] ss:$16 sps:$4 sm:$0xff]  }
  0x2f   :  { %963 = vmatpush2.bf16.msra.mxu0 %v1835_v46  ;;  %v1855_v46 = vld [vmem:[%s2586_s2 + $0x104] ss:$16 sps:$4 sm:$0xff]   ;;  %v109_v13 = vpack.c.bf16 %v101_v3, %v101_v3  ;;  %v2296_v44 = vld [vmem:[%s2585_s1] sm:$0x1]  ;;  %v1908_v2 = vld [vmem:[%s2586_s2 + $0x22c] ss:$16 sps:$4 sm:$0xff]  }
  0x30   :  { %1004 = vmatpush2.bf16.msra.mxu1 %v1836_v51  ;;  %964 = vmatprep.subr.bf16.mxu0 %v1837_v52  ;;  %v1857_v51 = vld [vmem:[%s2586_s2 + $0x304] ss:$16 sps:$4 sm:$0xff]   ;;  %v81_v52 = vrot.slane %v80_v42, 1  ;;  %v96_v63 = vadd.f32 %v95_v53, %v94_v43  ;;  %v98_v0 = vmul.f32 0.25, %v47_v54  ;;  %v108_v15 = vpack.c.bf16 %v100_v5, %v100_v5  ;;  %v1870_v43 = vld [vmem:[%s2586_s2 + $0x2e8] ss:$16 sps:$4 sm:$0xff]  }
  0x31   :  { %1005 = vmatprep.subr.bf16.mxu1 %v1839_v55  ;;  %v75_v55 = vadd.f32 %v74_v45, %v73_v35  ;;  %v1872_v35 = vld [vmem:[%s2586_s2 + $0x2ec] ss:$16 sps:$4 sm:$0xff]   ;;  %v1885_v54 = vld [vmem:[%s2586_s2 + $0x68] ss:$16 sps:$4 sm:$0xff]  }
  0x32   :  { %v82_v62 = vadd.f32 %v81_v52, %v80_v42  ;;  %v105_v8 = vmul.f32 0.25, %v96_v63  ;;  %v106_v9 = vpack.c.bf16 %v98_v0, %v98_v0  ;;  %v125_v27 = vunpack.c.l.b16 %v108_v15  ;;  %v1875_v42 = vld [vmem:[%s2586_s2 + $0xac] ss:$16 sps:$4 sm:$0xff]   ;;  %v1882_v52 = vld [vmem:[%s2586_s2 + $0x2a8] ss:$16 sps:$4 sm:$0xff]  }
  0x33   :  { %965 = vmatpush2.bf16.msra.mxu0 %v1841_v60  ;;  %v87_v60 = vadd.f32 %v86_v50, %v85_v40  ;;  %v2017_v40 = vmov 0   ;;  %v1878_v45 = vld [vmem:[%s2586_s2 + $0x2cc] ss:$16 sps:$4 sm:$0xff]   ;;  %v1879_v50 = vld [vmem:[%s2586_s2 + $0x88] ss:$16 sps:$4 sm:$0xff]  }
  0x34   :  { %1006 = vmatpush2.bf16.msra.mxu1 %v1842_v1  ;;  %966 = vmatprep.subr.bf16.mxu0 %v1843_v6  ;;  %v102_v1 = vmul.f32 0.25, %v75_v55  ;;  %v1863_v6 = vld [vmem:[%s2586_s2 + $0x404] ss:$16 sps:$4 sm:$0xff]   ;;  %v103_v7 = vmul.f32 0.25, %v82_v62  ;;  %v113_v17 = vpack.c.bf16 %v105_v8, %v105_v8  ;;  %v123_v18 = vunpack.c.l.b16 %v106_v9  ;;  %v1890_v53 = vld [vmem:[%s2586_s2 + $0x28c] ss:$16 sps:$4 sm:$0xff]  }
  0x35   :  { %1007 = vmatprep.subr.bf16.mxu1 %v1845_v11  ;;  %v88_v4 = vrot.slane %v87_v60, 1  ;;  %v1866_v11 = vld [vmem:[%s2586_s2 + $0xec] ss:$16 sps:$4 sm:$0xff]   ;;  %v1900_v63 = vld [vmem:[%s2586_s2 + $0x248] ss:$16 sps:$4 sm:$0xff]  }
  0x36   :  { %v110_v10 = vpack.c.bf16 %v102_v1, %v102_v1  ;;  %v111_v16 = vpack.c.bf16 %v103_v7, %v103_v7  ;;  %v130_v24 = vunpack.c.l.b16 %v113_v17  ;;  %v1893_v55 = vld [vmem:[%s2586_s2 + $0x4c] ss:$16 sps:$4 sm:$0xff]   ;;  %v1903_v1 = vld [vmem:[%s2586_s2 + $0x8] ss:$16 sps:$4 sm:$0xff]  }
  0x37   :  { %967 = vmatpush2.bf16.msra.mxu0 %v1847_v20  ;;  %v89_v14 = vadd.f32 %v88_v4, %v87_v60  ;;  %v124_v20 = vunpack.c.l.b16 %v107_v12  ;;  %v1894_v60 = vld [vmem:[%s2586_s2 + $0x268] ss:$16 sps:$4 sm:$0xff]   ;;  %v1902_v62 = vld [vmem:[%s2586_s2 + $0x24c] ss:$16 sps:$4 sm:$0xff]  }
  0x38   :  { %1008 = vmatpush2.bf16.msra.mxu1 %v1848_v21  ;;  %968 = vmatprep.subr.bf16.mxu0 %v1849_v30  ;;  %v127_v19 = vunpack.c.l.b16 %v110_v10  ;;  %v126_v21 = vunpack.c.l.b16 %v109_v13  ;;  %v128_v23 = vunpack.c.l.b16 %v111_v16  ;;  %v1905_v0 = vld [vmem:[%s2586_s2 + $0xc] ss:$16 sps:$4 sm:$0xff]   ;;  %v1906_v3 = vld [vmem:[%s2586_s2 + $0x228] ss:$16 sps:$4 sm:$0xff]  }
  0x39   :  { %1009 = vmatprep.subr.bf16.mxu1 %v1851_v31  ;;  %v104_v22 = vmul.f32 0.25, %v89_v14  ;;  %v1911_v4 = vld [vmem:[%s2586_s2 + $0x1ec] ss:$16 sps:$4 sm:$0xff]   ;;  %v1909_v5 = vld [vmem:[%s2586_s2 + $0x1e8] ss:$16 sps:$4 sm:$0xff]  }
  0x3a   :  { %v132_v25 = vsel %vm131_vm1, %v127_v19, %v123_v18  ;;  %v133_v28 = vsel %vm131_vm1, %v128_v23, %v124_v20  ;;  %v135_v29 = vsel %vm131_vm1, %v130_v24, %v126_v21  ;;  %v1917_v7 = vld [vmem:[%s2586_s2 + $0x1cc] ss:$16 sps:$4 sm:$0xff]   ;;  %v1912_v8 = vld [vmem:[%s2586_s2 + $0x208] ss:$16 sps:$4 sm:$0xff]  }
  0x3b   :  { %969 = vmatpush2.bf16.msra.mxu0 %v1853_v36  ;;  %v112_v26 = vpack.c.bf16 %v104_v22, %v104_v22  ;;  %v2264_v30 = vpack.c.b16 %v132_v25, %v132_v25  ;;  %v137_v31 = vpack.c.b16 %v133_v28, %v133_v28  ;;  %v139_v32 = vpack.c.b16 %v135_v29, %v135_v29  ;;  %v1920_v9 = vld [vmem:[%s2586_s2 + $0x3ec] ss:$16 sps:$4 sm:$0xff]   ;;  %v1915_v10 = vld [vmem:[%s2586_s2 + $0x1c8] ss:$16 sps:$4 sm:$0xff]  }
  0x3c   :  { %1010 = vmatpush2.bf16.msra.mxu1 %v1854_v41  ;;  %970 = vmatprep.subr.bf16.mxu0 %v1855_v46  ;;  %v1867_v41 = vld [vmem:[%s2586_s2 + $0xc8] ss:$16 sps:$4 sm:$0xff]   ;;  %v1926_v13 = vld [vmem:[%s2586_s2 + $0x3cc] ss:$16 sps:$4 sm:$0xff]  }
  0x3d   :  { %1011 = vmatprep.subr.bf16.mxu1 %v1857_v51  ;;  %v129_v33 = vunpack.c.l.b16 %v112_v26  ;;  %972 = vmatprep.mubr.bf16.mxu0 %v137_v31  ;;  %v1873_v46 = vld [vmem:[%s2586_s2 + $0xa8] ss:$16 sps:$4 sm:$0xff]   ;;  %v1887_v51 = vld [vmem:[%s2586_s2 + $0x6c] ss:$16 sps:$4 sm:$0xff]  }
  0x3e   :  { %1013 = vmatprep.mubr.bf16.mxu1 %v139_v32  ;;  %v1918_v12 = vld [vmem:[%s2586_s2 + $0x3e8] ss:$16 sps:$4 sm:$0xff]   ;;  %v1929_v15 = vld [vmem:[%s2586_s2 + $0x18c] ss:$16 sps:$4 sm:$0xff]  }
  0x3f   :  { %971 = vmatpush2.bf16.msra.mxu0 %v1859_v56  ;;  %v134_v36 = vsel %vm131_vm1, %v129_v33, %v125_v27  ;;  %v1888_v56 = vld [vmem:[%s2586_s2 + $0x288] ss:$16 sps:$4 sm:$0xff]   ;;  %v1932_v17 = vld [vmem:[%s2586_s2 + $0x3ac] ss:$16 sps:$4 sm:$0xff]  }
  0x40   :  { %1012 = vmatpush2.bf16.msra.mxu1 %v1860_v61  ;;  %1036 = vmatprep.subr.bf16.mxu0 %v1863_v6  ;;  %v2277_v38 = vpack.c.b16 %v134_v36, %v134_v36  ;;  %v1897_v61 = vld [vmem:[%s2586_s2 + $0x28] ss:$16 sps:$4 sm:$0xff]   ;;  %v1914_v6 = vld [vmem:[%s2586_s2 + $0x20c] ss:$16 sps:$4 sm:$0xff]  }
  0x41   :  { %1063 = vmatprep.subr.bf16.mxu1 %v1866_v11  ;;  %v1923_v11 = vld [vmem:[%s2586_s2 + $0x1ac] ss:$16 sps:$4 sm:$0xff]   ;;  %v1921_v14 = vld [vmem:[%s2586_s2 + $0x1a8] ss:$16 sps:$4 sm:$0xff]  }
  0x42   :  { %973 = vmatmul.mubr.bf16.vlgmr.msra.gmra.mxu0 %v2264_v30  ;;  %v1924_v16 = vld [vmem:[%s2586_s2 + $0x3c8] ss:$16 sps:$4 sm:$0xff]   ;;  %v1935_v19 = vld [vmem:[%s2586_s2 + $0x16c] ss:$16 sps:$4 sm:$0xff]  }
  0x43   :  { %1037 = vmatpush1.bf16.msra.mxu0 %v1861_v34  ;;  %1054 = vmatprep.mubr.bf16.mxu0 %v2017_v40  ;;  %v1927_v18 = vld [vmem:[%s2586_s2 + $0x188] ss:$16 sps:$4 sm:$0xff]  }
  0x44   :  { %1014 = vmatmul.mubr.bf16.vlgmr.msra.gmra.mxu1 %v2277_v38  ;;  %1104 = vmatprep.subr.bf16.mxu0 %v1872_v35  ;;  %v1930_v20 = vld [vmem:[%s2586_s2 + $0x3a8] ss:$16 sps:$4 sm:$0xff]  }
  0x45   :  { %1064 = vmatpush1.bf16.msra.mxu1 %v1864_v37  ;;  %1095 = vmatprep.mubr.bf16.mxu1 %v137_v31 }
  0x46   :  { %1065 = vmatprep.subr.bf16.mxu1 %v1869_v39 }
  0x49   :  { %1066 = vmatpush1.bf16.msra.mxu1 %v1867_v41 }
  0x4a   :  { %1684 = vmatmul.mubr.msk.bf16.vlgmr.msra.gmra.mxu0 %vm936_vm2, %v2296_v44  ;;  %1067 = vmatprep.subr.bf16.mxu1 %v1875_v42 }
  0x4b   :  { %1105 = vmatpush1.bf16.msra.mxu0 %v1870_v43  ;;  %1136 = vmatprep.mubr.bf16.mxu0 %v139_v32 }
  0x4c   :  { %1106 = vmatprep.subr.bf16.mxu0 %v1878_v45 }
  0x4d   :  { %1068 = vmatpush1.bf16.msra.mxu1 %v1873_v46 }
  0x4e   :  { %1069 = vmatprep.subr.bf16.mxu1 %v1881_v47 }
  0x4f   :  { %1107 = vmatpush1.bf16.msra.mxu0 %v1876_v48 }
  0x50   :  { %1108 = vmatprep.subr.bf16.mxu0 %v1884_v49 }
  0x51   :  { %1070 = vmatpush1.bf16.msra.mxu1 %v1879_v50 }
  0x52   :  { %1071 = vmatprep.subr.bf16.mxu1 %v1887_v51 }
  0x53   :  { %1109 = vmatpush1.bf16.msra.mxu0 %v1882_v52 }
  0x54   :  { %1110 = vmatprep.subr.bf16.mxu0 %v1890_v53 }
  0x55   :  { %1072 = vmatpush1.bf16.msra.mxu1 %v1885_v54 }
  0x56   :  { %1073 = vmatprep.subr.bf16.mxu1 %v1893_v55 }
  0x57   :  { %1111 = vmatpush1.bf16.msra.mxu0 %v1888_v56 }
  0x58   :  { %1112 = vmatprep.subr.bf16.mxu0 %v1896_v57 }
  0x59   :  { %1074 = vmatpush1.bf16.msra.mxu1 %v1891_v58 }
  0x5a   :  { %1075 = vmatprep.subr.bf16.mxu1 %v1899_v59 }
  0x5b   :  { %1113 = vmatpush1.bf16.msra.mxu0 %v1894_v60 }
  0x5c   :  { %1114 = vmatprep.subr.bf16.mxu0 %v1902_v62 }
  0x5d   :  { %1076 = vmatpush1.bf16.msra.mxu1 %v1897_v61 }
  0x5e   :  { %1077 = vmatprep.subr.bf16.mxu1 %v1905_v0 }
  0x5f   :  { %1115 = vmatpush1.bf16.msra.mxu0 %v1900_v63 }
  0x60   :  { %1116 = vmatprep.subr.bf16.mxu0 %v1908_v2 }
  0x61   :  { %1078 = vmatpush1.bf16.msra.mxu1 %v1903_v1 }
  0x62   :  { %1079 = vmatprep.subr.bf16.mxu1 %v1911_v4 }
  0x63   :  { %1117 = vmatpush1.bf16.msra.mxu0 %v1906_v3 }
  0x64   :  { %1118 = vmatprep.subr.bf16.mxu0 %v1914_v6 }
  0x65   :  { %1080 = vmatpush2.bf16.msra.mxu1 %v1909_v5 }
  0x66   :  { %1081 = vmatprep.subr.bf16.mxu1 %v1917_v7 }
  0x67   :  { %1119 = vmatpush1.bf16.msra.mxu0 %v1912_v8 }
  0x68   :  { %1120 = vmatprep.subr.bf16.mxu0 %v1920_v9 }
  0x69   :  { %1082 = vmatpush2.bf16.msra.mxu1 %v1915_v10 }
  0x6a   :  { %1083 = vmatprep.subr.bf16.mxu1 %v1923_v11 }
  0x6b   :  { %1121 = vmatpush2.bf16.msra.mxu0 %v1918_v12 }
  0x6c   :  { %1122 = vmatprep.subr.bf16.mxu0 %v1926_v13 }
  0x6d   :  { %1084 = vmatpush2.bf16.msra.mxu1 %v1921_v14 }
  0x6e   :  { %1085 = vmatprep.subr.bf16.mxu1 %v1929_v15 }
  0x6f   :  { %1123 = vmatpush2.bf16.msra.mxu0 %v1924_v16 }
  0x70   :  { %10 = vsyncpa [#allocation3], 0  ;;  %1124 = vmatprep.subr.bf16.mxu0 %v1932_v17  ;;  %v1938_v21 = vld [vmem:[%s2586_s2 + $0x38c] ss:$16 sps:$4 sm:$0xff]   ;;  %v1933_v22 = vld [vmem:[%s2586_s2 + $0x168] ss:$16 sps:$4 sm:$0xff]  }
  0x71   :  { %1086 = vmatpush2.bf16.msra.mxu1 %v1927_v18  ;;  %v1941_v23 = vld [vmem:[%s2586_s2 + $0x14c] ss:$16 sps:$4 sm:$0xff]   ;;  %v1936_v24 = vld [vmem:[%s2586_s2 + $0x388] ss:$16 sps:$4 sm:$0xff]   ;;  %v1965_v46 = vld [vmem:[%s2587_s3 + $0x70] sm:$0xff]   ;;  %s2018_s9 = smov [#allocation2]  }
  0x72   :  { %1087 = vmatprep.subr.bf16.mxu1 %v1935_v19  ;;  %v1944_v25 = vld [vmem:[%s2586_s2 + $0x36c] ss:$16 sps:$4 sm:$0xff]   ;;  %v1939_v26 = vld [vmem:[%s2586_s2 + $0x148] ss:$16 sps:$4 sm:$0xff]   ;;  %v1981_v51 = vld [vmem:[%s2587_s3 + $0xf0] sm:$0xff]   ;;  %s1544_s10 = sshll.u32 %s2018_s9, 4  ;;  %s1545_s10 = int_to_ptr.vmem [resolvable:$true] %s1544_s10 }
  0x73   :  { %1125 = vmatpush2.bf16.msra.mxu0 %v1930_v20  ;;  %v1947_v27 = vld [vmem:[%s2586_s2 + $0x12c] ss:$16 sps:$4 sm:$0xff]   ;;  %v1942_v28 = vld [vmem:[%s2586_s2 + $0x368] ss:$16 sps:$4 sm:$0xff]   ;;  %v1982_v53 = vld [vmem:[%s2587_s3 + $0xb0] sm:$0xff]   ;;  %s1995_s11 = scalar_lea.vmem %s1545_s10, 32  ;;  %p2000_p1 = scmp.lt.s32.totalorder %s1545_s10, %s1545_s10 }
  0x74   :  { %1126 = vmatprep.subr.bf16.mxu0 %v1938_v21  ;;  %v1950_v29 = vld [vmem:[%s2586_s2 + $0x34c] ss:$16 sps:$4 sm:$0xff]   ;;  %v1945_v31 = vld [vmem:[%s2586_s2 + $0x128] ss:$16 sps:$4 sm:$0xff]   ;;  %v1973_v54 = vld [vmem:[%s2587_s3 + $0x50] sm:$0xff]   ;;  %p1996_p0 = scmp.ne.s32.totalorder %s1545_s10, %s1995_s11  ;;  %p2001_p2 = scmp.lt.s32.totalorder %s1995_s11, %s1995_s11 }
  0x75   :  { %1088 = vmatpush2.bf16.msra.mxu1 %v1933_v22  ;;  %v1953_v32 = vld [vmem:[%s2586_s2 + $0x10c] ss:$16 sps:$4 sm:$0xff]   ;;  %v1948_v33 = vld [vmem:[%s2586_s2 + $0x348] ss:$16 sps:$4 sm:$0xff]   ;;  %v1974_v56 = vld [vmem:[%s2587_s3 + $0x10] sm:$0xff]  }
  0x76   :  { %1089 = vmatprep.subr.bf16.mxu1 %v1941_v23  ;;  %v1956_v34 = vld [vmem:[%s2586_s2 + $0x32c] ss:$16 sps:$4 sm:$0xff]   ;;  %v1951_v35 = vld [vmem:[%s2586_s2 + $0x108] ss:$16 sps:$4 sm:$0xff]   ;;  %v1985_v59 = vld [vmem:[%s2587_s3 + $0xe0] sm:$0xff]   ;;  %p2002_p3 = por %p2001_p2, %p2000_p1 }
  0x77   :  { %1127 = vmatpush2.bf16.msra.mxu0 %v1936_v24  ;;  %v1959_v36 = vld [vmem:[%s2586_s2 + $0x40c] ss:$16 sps:$4 sm:$0xff]   ;;  %v1954_v37 = vld [vmem:[%s2586_s2 + $0x328] ss:$16 sps:$4 sm:$0xff]   ;;  %v1977_v61 = vld [vmem:[%s2587_s3 + $0x40] sm:$0xff]  }
  0x78   :  { %1128 = vmatprep.subr.bf16.mxu0 %v1944_v25  ;;  %v1962_v39 = vld [vmem:[%s2586_s2 + $0x30c] ss:$16 sps:$4 sm:$0xff]   ;;  %v1957_v41 = vld [vmem:[%s2586_s2 + $0x408] ss:$16 sps:$4 sm:$0xff]   ;;  %v1978_v62 = vld [vmem:[%s2587_s3] sm:$0xff]   ;;  %p2003_p4 = pnand %p2002_p3, %p1996_p0 }
  0x79   :  { %1090 = vmatpush2.bf16.msra.mxu1 %v1939_v26  ;;  %v1960_v42 = vld [vmem:[%s2586_s2 + $0x308] ss:$16 sps:$4 sm:$0xff]   ;;  %v1986_v63 = vld [vmem:[%s2587_s3 + $0xa0] sm:$0xff]   ;;  %v1989_v2 = vld [vmem:[%s2587_s3 + $0xd0] sm:$0xff]  }
  0x7a   :  { %1091 = vmatprep.subr.bf16.mxu1 %v1947_v27  ;;  %v1963_v43 = vld [vmem:[%s2587_s3 + $0x78] sm:$0xff]   ;;  %v1968_v47 = vld [vmem:[%s2587_s3 + $0x28] sm:$0xff]   ;;  %v1990_v3 = vld [vmem:[%s2587_s3 + $0x90] sm:$0xff]  }
  0x7b   :  { %1129 = vmatpush2.bf16.msra.mxu0 %v1942_v28  ;;  %v1964_v45 = vld [vmem:[%s2587_s3 + $0x38] sm:$0xff]   ;;  %v1983_v55 = vld [vmem:[%s2587_s3 + $0xe8] sm:$0xff]   ;;  %v1993_v6 = vld [vmem:[%s2587_s3 + $0xc0] sm:$0xff]  }
  0x7c   :  { %1130 = vmatprep.subr.bf16.mxu0 %v1950_v29  ;;  %v1971_v48 = vld [vmem:[%s2587_s3 + $0x58] sm:$0xff]   ;;  %v1984_v57 = vld [vmem:[%s2587_s3 + $0xa8] sm:$0xff]   ;;  %v1994_v7 = vld [vmem:[%s2587_s3 + $0x80] sm:$0xff]  }
  0x7d   :  { %1092 = vmatpush2.bf16.msra.mxu1 %v1945_v31  ;;  %v1979_v49 = vld [vmem:[%s2587_s3 + $0xf8] sm:$0xff]   ;;  %v1975_v58 = vld [vmem:[%s2587_s3 + $0x48] sm:$0xff]  }
  0x7e   :  { %1093 = vmatprep.subr.bf16.mxu1 %v1953_v32  ;;  %v1980_v50 = vld [vmem:[%s2587_s3 + $0xb8] sm:$0xff]   ;;  %v1976_v60 = vld [vmem:[%s2587_s3 + $0x8] sm:$0xff]  }
  0x7f   :  { %1131 = vmatpush2.bf16.msra.mxu0 %v1948_v33  ;;  %v1972_v52 = vld [vmem:[%s2587_s3 + $0x18] sm:$0xff]   ;;  %v1991_v4 = vld [vmem:[%s2587_s3 + $0xc8] sm:$0xff]  }
  0x80   :  { %1132 = vmatprep.subr.bf16.mxu0 %v1956_v34  ;;  %v1987_v0 = vld [vmem:[%s2587_s3 + $0xd8] sm:$0xff]   ;;  %v1992_v5 = vld [vmem:[%s2587_s3 + $0x88] sm:$0xff]  }
  0x81   :  { %1094 = vmatpush2.bf16.msra.mxu1 %v1951_v35  ;;  %v1988_v1 = vld [vmem:[%s2587_s3 + $0x98] sm:$0xff]  }
  0x82   :  { %1159 = vmatprep.subr.bf16.mxu1 %v1959_v36 }
  0x83   :  { %1133 = vmatpush2.bf16.msra.mxu0 %v1954_v37 }
  0x84   :  { %1096 = vmatmul.mubr.bf16.vlgmr.msra.gmra.mxu1 %v2264_v30  ;;  %1134 = vmatprep.subr.bf16.mxu0 %v1962_v39  ;;  %v1966_v30 = vld [vmem:[%s2587_s3 + $0x30] sm:$0xff]  }
  0x85   :  { %1160 = vmatpush1.bf16.msra.mxu1 %v1957_v41  ;;  %1177 = vmatprep.mubr.bf16.mxu1 %v2017_v40  ;;  %v1967_v40 = vld [vmem:[%s2587_s3 + $0x68] sm:$0xff]  }
  0x86   :  { %1741 = vmatprep.subr.bf16.mxu1 %v1979_v49 }
  0x87   :  { %1135 = vmatpush2.bf16.msra.mxu0 %v1960_v42 }
  0x88   :  { %1719 = vmatprep.subr.bf16.mxu0 %v1963_v43 }
  0x8a   :  { %1137 = vmatmul.mubr.bf16.vlgmr.msra.gmra.mxu0 %v2277_v38  ;;  %v1969_v38 = vld [vmem:[%s2587_s3 + $0x60] sm:$0xff]  }
  0x8b   :  { %1720 = vmatpush3.bf16.msra.mxu0 %v1964_v45 }
  0x8c   :  { %1685 = vmatmul.mubr.msk.bf16.vlgmr.msra.gmra.mxu1 %vm936_vm2, %v2296_v44  ;;  %1721 = vmatprep.subr.bf16.mxu0 %v1965_v46  ;;  %v1970_v44 = vld [vmem:[%s2587_s3 + $0x20] sm:$0xff]  }
  0x8d   :  { %1742 = vmatpush3.bf16.msra.mxu1 %v1980_v50 }
  0x8e   :  { %1743 = vmatprep.subr.bf16.mxu1 %v1981_v51 }
  0x8f   :  { %1722 = vmatpush3.bf16.msra.mxu0 %v1966_v30 }
  0x90   :  { %1723 = vmatprep.subr.bf16.mxu0 %v1967_v40 }
  0x91   :  { %1744 = vmatpush3.bf16.msra.mxu1 %v1982_v53  ;;  %v1686_v53 = vld [vmem:[%s2588_s4] ss:$0 sm:$0xff] }
  0x92   :  { %1745 = vmatprep.subr.bf16.mxu1 %v1983_v55 }
  0x93   :  { %1724 = vmatpush3.bf16.msra.mxu0 %v1968_v47 }
  0x94   :  { %1725 = vmatprep.subr.bf16.mxu0 %v1969_v38 }
  0x95   :  { %1746 = vmatpush3.bf16.msra.mxu1 %v1984_v57 }
  0x96   :  { %1747 = vmatprep.subr.bf16.mxu1 %v1985_v59 }
  0x97   :  { %1726 = vmatpush3.bf16.msra.mxu0 %v1970_v44 }
  0x98   :  { %1727 = vmatprep.subr.bf16.mxu0 %v1971_v48 }
  0x99   :  { %1748 = vmatpush3.bf16.msra.mxu1 %v1986_v63 }
  0x9a   :  { %1749 = vmatprep.subr.bf16.mxu1 %v1987_v0 }
  0x9b   :  { %1728 = vmatpush3.bf16.msra.mxu0 %v1972_v52 }
  0x9c   :  { %1729 = vmatprep.subr.bf16.mxu0 %v1973_v54 }
  0x9d   :  { %1750 = vmatpush3.bf16.msra.mxu1 %v1988_v1 }
  0x9e   :  { %1751 = vmatprep.subr.bf16.mxu1 %v1989_v2 }
  0x9f   :  { %1730 = vmatpush3.bf16.msra.mxu0 %v1974_v56 }
  0xa0   :  { %1731 = vmatprep.subr.bf16.mxu0 %v1975_v58 }
  0xa1   :  { %1752 = vmatpush3.bf16.msra.mxu1 %v1990_v3 }
  0xa2   :  { %1753 = vmatprep.subr.bf16.mxu1 %v1991_v4 }
  0xa3   :  { %1732 = vmatpush3.bf16.msra.mxu0 %v1976_v60 }
  0xa4   :  { %1733 = vmatprep.subr.bf16.mxu0 %v1977_v61 }
  0xa5   :  { %1754 = vmatpush3.bf16.msra.mxu1 %v1992_v5 }
  0xa6   :  { %1755 = vmatprep.subr.bf16.mxu1 %v1993_v6 }
  0xa7   :  { %1734 = vmatpush3.bf16.msra.mxu0 %v1978_v62 }
  0xa9   :  { %1756 = vmatpush3.bf16.msra.mxu1 %v1994_v7 }
 0x102   :  { %v974_v8 = vpop.f32.mrf.mxu0 }
 0x104   :  { %v1015_v9 = vpop.f32.mrf.mxu1  ;;  %v976_v10 = vpop.f32.mrf.mxu0 }
 0x105   :  { %v1016_v15 = vadd.f32 %v1015_v9, %v974_v8 }
 0x106   :  { %v1017_v11 = vpop.f32.mrf.mxu1  ;;  %v978_v12 = vpop.f32.mrf.mxu0 }
 0x107   :  { %v1018_v18 = vadd.f32 %v1017_v11, %v976_v10 }
 0x108   :  { %v1019_v13 = vpop.f32.mrf.mxu1  ;;  %v979_v14 = vpop.f32.mrf.mxu0 }
 0x10a   :  { %v1020_v16 = vpop.f32.mrf.mxu1  ;;  %v1056_v17 = vpop.f32.mrf.mxu0 }
 0x10b   :  { %v1057_v19 = vadd.f32 %v1056_v17, %v1016_v15 }
 0x10c   :  { %v1058_v20 = vpop.f32.mrf.mxu0 }
 0x10d   :  { %v1059_v21 = vadd.f32 %v1058_v20, %v1018_v18  ;;  %v1186_v22 = vmax.f32 %v1057_v19, 0.0 }
 0x10e   :  { %v1060_v23 = vpop.f32.mrf.mxu0 }
 0x10f   :  { %v1187_v24 = vmax.f32 %v1059_v21, 0.0  ;;  %v1190_v27 = vpack.c.bf16 %v1186_v22, %v1186_v22 }
 0x110   :  { %v1061_v25 = vpop.f32.mrf.mxu0 }
 0x111   :  { %v1191_v26 = vpack.c.bf16 %v1187_v24, %v1187_v24 }
 0x113   :  { %1489 = vmatprep.mubr.bf16.mxu0 %v1191_v26 }
 0x114   :  { %1490 = vmatmul.mubr.bf16.vlgmr.msra.gmra.mxu0 %v1190_v27 }
 0x144   :  { %v1097_v28 = vpop.f32.mrf.mxu1 }
 0x146   :  { %v1099_v29 = vpop.f32.mrf.mxu1 }
 0x148   :  { %v1101_v31 = vpop.f32.mrf.mxu1 }
 0x14a   :  { %v1102_v32 = vpop.f32.mrf.mxu1  ;;  %v1138_v33 = vpop.f32.mrf.mxu0 }
 0x14b   :  { %v1139_v34 = vadd.f32 %v1138_v33, %v1097_v28 }
 0x14c   :  { %v1179_v35 = vpop.f32.mrf.mxu1  ;;  %v1140_v36 = vpop.f32.mrf.mxu0 }
 0x14d   :  { %v1180_v37 = vadd.f32 %v1179_v35, %v1139_v34  ;;  %v1141_v39 = vadd.f32 %v1140_v36, %v1099_v29 }
 0x14e   :  { %v1181_v41 = vpop.f32.mrf.mxu1  ;;  %v1142_v42 = vpop.f32.mrf.mxu0 }
 0x14f   :  { %v1182_v43 = vadd.f32 %v1181_v41, %v1141_v39  ;;  %v1188_v45 = vmax.f32 %v1180_v37, 0.0 }
 0x150   :  { %v1183_v46 = vpop.f32.mrf.mxu1  ;;  %v1143_v30 = vpop.f32.mrf.mxu0 }
 0x151   :  { %v1189_v40 = vmax.f32 %v1182_v43, 0.0  ;;  %v1192_v44 = vpack.c.bf16 %v1188_v45, %v1188_v45 }
 0x152   :  { %v1184_v47 = vpop.f32.mrf.mxu1 }
 0x153   :  { %v1193_v38 = vpack.c.bf16 %v1189_v40, %v1189_v40 }
 0x155   :  { %1529 = vmatprep.mubr.bf16.mxu1 %v1193_v38 }
 0x156   :  { %1530 = vmatmul.mubr.bf16.vlgmr.msra.gmra.mxu1 %v1192_v44 }
 0x1d4   :  { %v1735_v48 = vpop.f32.mrf.mxu0 }
 0x1d6   :  { %v1736_v49 = vpop.f32.mrf.mxu0 }
 0x1d7   :  { %v1737_v50 = vadd.f32 %v1736_v49, %v1735_v48 }
 0x1d8   :  { %v1738_v51 = vpop.f32.mrf.mxu0 }
 0x1d9   :  { %v1492_v56 = vadd.f32 %v1737_v50, %v1686_v53 }
 0x1da   :  { %v1739_v52 = vpop.f32.mrf.mxu0 }
 0x216   :  { %v1757_v54 = vpop.f32.mrf.mxu1 }
 0x218   :  { %v1758_v55 = vpop.f32.mrf.mxu1 }
 0x219   :  { %v1759_v57 = vadd.f32 %v1758_v55, %v1757_v54 }
 0x21a   :  { %v1760_v58 = vpop.f32.mrf.mxu1 }
 0x21b   :  { %v1532_v59 = vadd.f32 %v1759_v57, %v1492_v56 }
 0x21c   :  { %v1761_v60 = vpop.f32.mrf.mxu1 }
 0x21d   :  { %1537 = vst [vmem:[#allocation2] sm:$0x3] %v1532_v59 }
 0x21e   :  { %2006 = shalt.err (!%p2003_p4)
}
 0x21f   :  { %1547 = dma.vmem_to_hbm [thread:$0]  %s1545_s10, 32, %s2589_s5, [#allocation3]  }
 0x220   :  { %2015 = dma.done.wait [#allocation3], 32  }
 0x221   :  { %2016 = vsyncadd [#allocation3], 4294967264 }
 0x222   :  { %1551 = vsyncpa [#allocation3], 1 }

</bundles_post_ra>
